<compile_context>
chip_gen: v7x
topology: tpu7x:2x2x1
jax: 0.10.0
libtpu: 0.0.40
codegen_flags: <defaults>
</compile_context>

<pallas_src>
import functools

import jax
import jax.numpy as jnp
from jax.experimental import pallas as pl
from jax.experimental.pallas import tpu as pltpu

LANE = 128       # TPU lane width; output feature dim padded to this for dense stores.
ROW_ALIGN = 16   # bf16 sublane tile height; align packed weight blocks to it.


def _round_up(n, m):
    return ((n + m - 1) // m) * m


def _qnet_kernel(x_ref, w_ref, b_ref, o_ref, *, input_size, hidden_size, w2_row_offset):
    """Fused MLP forward: relu(x @ w1 + b1) @ w2 + b2 on one VMEM-resident tile.

    w_ref (bf16) packs w1 at rows [0:I, 0:H] and w2 at rows
    [w2_row_offset : w2_row_offset+H, :].  b_ref (f32) packs b1 in row 0
    (cols 0:H) and b2 in row 1 (all Op lanes).  All slices are static.
    """
    I, H = input_size, hidden_size

    x = x_ref[...].astype(jnp.bfloat16)                    # [B, I]   bf16 -> MXU
    w1 = w_ref[0:I, 0:H]                                   # [I, H]   bf16 (static view)
    w2 = w_ref[w2_row_offset:w2_row_offset + H, :]         # [H, Op]  bf16 (static view)
    b1 = b_ref[0:1, 0:H]                                   # [1, H]   f32
    b2 = b_ref[1:2, :]                                     # [1, Op]  f32

    # Layer 1: Linear (bf16 MXU, f32 accumulate) + bias + ReLU in f32 (VPU).
    h = jnp.dot(x, w1, preferred_element_type=jnp.float32) + b1
    h = jnp.maximum(h, 0.0)

    # Layer 2: Linear (bf16 MXU, f32 accumulate) + bias in f32. Lane-dense store.
    y = jnp.dot(h.astype(jnp.bfloat16), w2, preferred_element_type=jnp.float32) + b2
    o_ref[...] = y.astype(o_ref.dtype)


@functools.partial(jax.jit, static_argnames=("input_size", "hidden_size", "out_size"))
def qnet_forward(x, w_packed, b_packed, *, input_size, hidden_size, out_size):
    """Single-shot fused MLP. Expects packed params (see pack_params); returns
    only the first `out_size` output columns.

    Amortization note: callers evaluating many states (batched action
    selection / replay-buffer training) should pass them as one [B, I] batch —
    the launch + DMA overhead dwarfs the compute at small B.
    """
    B, _ = x.shape
    Op = w_packed.shape[1]

    flops = 2 * B * input_size * hidden_size + 2 * B * hidden_size * Op
    bytes_accessed = (
        4 * x.size            # f32 activations in
        + 2 * w_packed.size   # bf16 weights
        + 4 * b_packed.size   # f32 biases
        + 4 * B * Op          # f32 output
    )

    kernel = functools.partial(
        _qnet_kernel,
        input_size=input_size,
        hidden_size=hidden_size,
        w2_row_offset=_round_up(input_size, ROW_ALIGN),
    )

    out = pl.pallas_call(
        kernel,
        out_shape=jax.ShapeDtypeStruct((B, Op), jnp.float32),
        in_specs=[pl.BlockSpec(memory_space=pltpu.MemorySpace.VMEM)] * 3,
        out_specs=pl.BlockSpec(memory_space=pltpu.MemorySpace.VMEM),
        cost_estimate=pl.CostEstimate(
            flops=flops, transcendentals=0, bytes_accessed=bytes_accessed),
    )(x, w_packed, b_packed)
    # Negligible at small B; at training batch sizes prefer slicing at the
    # final consumer to avoid re-reading the padded [B, Op] result.
    return out[:, :out_size]


def init_params(key, input_size, hidden_size, output_size):
    """Deterministic init mimicking nn.Linear's default U(-1/sqrt(fan_in), ...).
    Weights returned pre-transposed to [in, out], f32, unpadded."""
    k1, k2, k3, k4 = jax.random.split(key, 4)
    bound1 = 1.0 / jnp.sqrt(input_size)
    bound2 = 1.0 / jnp.sqrt(hidden_size)
    w1 = jax.random.uniform(k1, (input_size, hidden_size), jnp.float32, -bound1, bound1)
    b1 = jax.random.uniform(k2, (1, hidden_size), jnp.float32, -bound1, bound1)
    w2 = jax.random.uniform(k3, (hidden_size, output_size), jnp.float32, -bound2, bound2)
    b2 = jax.random.uniform(k4, (1, output_size), jnp.float32, -bound2, bound2)
    return w1, b1, w2, b2


def pack_params(w1, b1, w2, b2):
    """Pack the 4 parameter arrays into 2 buffers, once at init.

    * weights -> one bf16 buffer [I_pad + H_pad, Op]:
        rows [0:I,           0:H ] = w1
        rows [I_pad:I_pad+H, 0:O ] = w2
      Row blocks aligned to 16 (bf16 sublane tile); only the OUTPUT dim is
      padded to 128 lanes.  Padding entries are exactly zero, so the padded
      output columns are provably zero through bias-add and get sliced off.
    * biases  -> one f32 buffer [2, Op]: row 0 = b1 (cols 0:H), row 1 = b2.
    """
    I, H = w1.shape
    H2, O = w2.shape
    assert H2 == H
    Op = _round_up(O, LANE)
    I_pad = _round_up(I, ROW_ALIGN)
    H_pad = _round_up(H, ROW_ALIGN)

    w_packed = jnp.zeros((I_pad + H_pad, Op), jnp.bfloat16)
    w_packed = w_packed.at[:I, :H].set(w1.astype(jnp.bfloat16))
    w_packed = w_packed.at[I_pad:I_pad + H, :O].set(w2.astype(jnp.bfloat16))

    b_packed = jnp.zeros((2, Op), jnp.float32)
    b_packed = b_packed.at[0, :H].set(b1.reshape(-1))
    b_packed = b_packed.at[1, :O].set(b2.reshape(-1))
    return w_packed, b_packed


# TODO(synk): Linear_QNet.save() (torch.save of the state_dict) is file I/O,
# not part of the forward pass — intentionally not implemented here.

if __name__ == "__main__":
    # Small shapes consistent with the module's forward (pure MLP on [B, F]).
    batch, input_size, hidden_size, output_size = 8, 16, 32, 4

    key = jax.random.PRNGKey(0)
    kx, kp = jax.random.split(key)
    x = jax.random.normal(kx, (batch, input_size), jnp.float32)
    w1, b1, w2, b2 = init_params(kp, input_size, hidden_size, output_size)
    w_packed, b_packed = pack_params(w1, b1, w2, b2)

    out = qnet_forward(
        x, w_packed, b_packed,
        input_size=input_size, hidden_size=hidden_size, out_size=output_size)
    jax.block_until_ready(out)

    # Pure-JAX f32 reference (same semantics as the PyTorch forward).
    # Tolerance loosened because the kernel feeds the MXU bf16 operands.
    ref = jnp.maximum(x @ w1 + b1, 0.0) @ w2 + b2
    assert out.shape == (batch, output_size), out.shape
    assert jnp.allclose(out, ref, atol=2e-2, rtol=2e-2), (
        f"max abs err {jnp.max(jnp.abs(out - ref))}")

    print("KERNEL_OK")
</pallas_src>

<mosaic_0001>
module attributes {stable_mosaic.version = 11 : i64} {
  func.func @_qnet_kernel(%arg0: memref<8x16xf32, #tpu.memory_space<vmem>>, %arg1: memref<48x128xbf16, #tpu.memory_space<vmem>>, %arg2: memref<2x128xf32, #tpu.memory_space<vmem>>, %arg3: memref<8x128xf32, #tpu.memory_space<vmem>>) attributes {dimension_semantics = [], scalar_prefetch = 0 : i64, scratch_operands = 0 : i64, tpu.core_type = #tpu.core_type<tc>} {
    %c0 = arith.constant 0 : index
    %c0_0 = arith.constant 0 : index
    %0 = vector.load %arg0[%c0, %c0_0] : memref<8x16xf32, #tpu.memory_space<vmem>>, vector<8x16xf32>
    %1 = arith.truncf %0 : vector<8x16xf32> to vector<8x16xbf16>
    %c0_1 = arith.constant 0 : index
    %c0_2 = arith.constant 0 : index
    %2 = vector.load %arg1[%c0_1, %c0_2] : memref<48x128xbf16, #tpu.memory_space<vmem>>, vector<16x32xbf16>
    %c16 = arith.constant 16 : index
    %c0_3 = arith.constant 0 : index
    %3 = vector.load %arg1[%c16, %c0_3] : memref<48x128xbf16, #tpu.memory_space<vmem>>, vector<32x128xbf16>
    %c0_4 = arith.constant 0 : index
    %c0_5 = arith.constant 0 : index
    %4 = vector.load %arg2[%c0_4, %c0_5] : memref<2x128xf32, #tpu.memory_space<vmem>>, vector<1x32xf32>
    %c1 = arith.constant 1 : index
    %c0_6 = arith.constant 0 : index
    %5 = vector.load %arg2[%c1, %c0_6] : memref<2x128xf32, #tpu.memory_space<vmem>>, vector<1x128xf32>
    %cst = arith.constant dense<0.000000e+00> : vector<8x32xf32>
    %6 = tpu.matmul %1, %2, %cst {dimension_numbers = #tpu.dot_dimension_numbers<[1], [0], [0], [1], [0, 0, 1, 1], [], []>} : vector<8x16xbf16>, vector<16x32xbf16>, vector<8x32xf32> -> vector<8x32xf32>
    %7 = vector.broadcast %4 : vector<1x32xf32> to vector<8x32xf32>
    %8 = arith.addf %6, %7 : vector<8x32xf32>
    %cst_7 = arith.constant 0.000000e+00 : f32
    %9 = vector.broadcast %cst_7 : f32 to vector<8x32xf32>
    %10 = arith.maximumf %8, %9 : vector<8x32xf32>
    %11 = arith.truncf %10 : vector<8x32xf32> to vector<8x32xbf16>
    %cst_8 = arith.constant dense<0.000000e+00> : vector<8x128xf32>
    %12 = tpu.matmul %11, %3, %cst_8 {dimension_numbers = #tpu.dot_dimension_numbers<[1], [0], [0], [1], [0, 0, 1, 1], [], []>} : vector<8x32xbf16>, vector<32x128xbf16>, vector<8x128xf32> -> vector<8x128xf32>
    %13 = vector.broadcast %5 : vector<1x128xf32> to vector<8x128xf32>
    %14 = arith.addf %12, %13 : vector<8x128xf32>
    %c0_9 = arith.constant 0 : index
    %c0_10 = arith.constant 0 : index
    %15 = vector.load %arg3[%c0_9, %c0_10] : memref<8x128xf32, #tpu.memory_space<vmem>>, vector<8x128xf32>
    tpu.vector_store %arg3[%c0_9, %c0_10], %14 {strides = array<i32>} : memref<8x128xf32, #tpu.memory_space<vmem>>, vector<8x128xf32>,
    return
  }
}

</mosaic_0001>

<bundles_post_ra>
// kernel: qnet_forward.1
= control target key start
LH: loop header
LB: loop body
LE: loop exit
PB: predicated region body
PF: predicated region fallthrough
CT: control target
= control target key end

     0   :  { %8 = vsyncpa [#allocation3], 0  ;;  %s323_s0 = inlined_call_operand.hbm [shape: f32[8,16], index: 0, kind: input, shape index: {}]   ;;  %s324_s1 = inlined_call_operand.hbm [shape: bf16[48,128], index: 1, kind: input, shape index: {}]   ;;  %s325_s2 = inlined_call_operand.vmem [shape: f32[2,128], index: 2, kind: input, shape index: {}]   ;;  %s326_s3 = inlined_call_operand.vmem [shape: f32[8,128], index: 3, kind: output, shape index: {}]  }
   0x1   :  { %9 = vsyncpa [#allocation5], 0  ;;  %s257_s12 = smov [#allocation2]   ;;  %s258_s14 = smov [#allocation4]  }
   0x2   :  { %s16_s13 = sshll.u32 %s257_s12, 4  ;;  %s25_s15 = sshll.u32 %s258_s14, 4  ;;  %s17_s13 = int_to_ptr.vmem [resolvable:$true] %s16_s13  ;;  %s283_s15 = int_to_ptr.vmem [resolvable:$true] %s25_s15 }
   0x3   :  { %s209_s18 = scalar_lea.hbm %s323_s0, 128 }
   0x4   :  { %p210_p0 = scmp.ne.s32.totalorder %s323_s0, %s209_s18  ;;  %p213_p1 = scmp.lt.u32.totalorder %s209_s18, %s323_s0 }
   0x6   :  { %p215_p2 = pnand %p213_p1, %p210_p0 }
   0x8   :  { %218 = shalt.err (!%p215_p2)
}
   0x9   :  { %s219_s23 = scalar_lea.vmem %s17_s13, 128  ;;  %p224_p4 = scmp.lt.s32.totalorder %s17_s13, %s17_s13 }
   0xa   :  { %p220_p3 = scmp.ne.s32.totalorder %s17_s13, %s219_s23  ;;  %p225_p5 = scmp.lt.s32.totalorder %s219_s23, %s219_s23 }
   0xc   :  { %p226_p6 = por %p225_p5, %p224_p4 }
   0xe   :  { %p227_p7 = pnand %p226_p6, %p220_p3 }
  0x10   :  { %230 = shalt.err (!%p227_p7)
}
  0x11   :  { %19 = dma.hbm_to_vmem [thread:$0]  %s323_s0, 128, %s17_s13, [#allocation3]  }
  0x12   :  { %s231_s28 = scalar_lea.hbm %s324_s1, 384 }
  0x13   :  { %p232_p8 = scmp.ne.s32.totalorder %s324_s1, %s231_s28  ;;  %p235_p9 = scmp.lt.u32.totalorder %s231_s28, %s324_s1 }
  0x15   :  { %p237_p10 = pnand %p235_p9, %p232_p8 }
  0x17   :  { %240 = shalt.err (!%p237_p10)
}
  0x18   :  { %s241_s6 = scalar_lea.vmem %s283_s15, 384  ;;  %p246_p12 = scmp.lt.s32.totalorder %s283_s15, %s283_s15 }
  0x19   :  { %p242_p11 = scmp.ne.s32.totalorder %s283_s15, %s241_s6  ;;  %p247_p13 = scmp.lt.s32.totalorder %s241_s6, %s241_s6 }
  0x1b   :  { %p248_p0 = por %p247_p13, %p246_p12 }
  0x1d   :  { %p249_p1 = pnand %p248_p0, %p242_p11 }
  0x1f   :  { %252 = shalt.err (!%p249_p1)
}
  0x20   :  { %s259_s0 = smov 64   ;;  %s260_s7 = smov 4  }
  0x21   :  { %31 = dma.hbm_to_vmem [thread:$0]  %s324_s1, 384, %s283_s15, [#allocation5], %s259_s0, %s259_s0, %s260_s7  }
  0x22   :  { %253 = dma.done.wait [#allocation3], 128  }
  0x23   :  { %254 = vsyncadd [#allocation3], 4294967168 }
  0x24   :  { %255 = dma.done.wait [#allocation5], 384  }
  0x25   :  { %256 = vsyncadd [#allocation5], 4294966912  ;;  %v261_v0 = vmov 0.0   ;;  %vm262_vm0 = vmmov 0   ;;  %v206_v1 = vld [vmem:[#allocation4] sm:$0xff]   ;;  %v41_v2 = vld [vmem:[#allocation2] sm:$0xff] }
  0x26   :  { %186 = vmatprep.subr.bf16.mxu0 %v261_v0  ;;  %188 = vmatprep.mubr.msk.bf16.mxu0 %vm262_vm0, %v261_v0  ;;  %vm61_vm1 = vcmask 130048   ;;  %v42_v3 = vpack.c.bf16 %v41_v2, %v41_v2  ;;  %v207_v4 = vld [vmem:[#allocation4 + $0x8] sm:$0xff]   ;;  %v208_v5 = vld [vmem:[#allocation4 + $0x10] sm:$0xff]   ;;  %v174_v6 = vld [vmem:[%s325_s2] ss:$0 sm:$0xff]  ;;  %vm123_vm2 = vcmask 261120  }
  0x27   :  { %192 = vmatprep.subr.bf16.mxu1 %v261_v0  ;;  %196 = vmatprep.mubr.msk.bf16.mxu1 %vm262_vm0, %v261_v0  ;;  %v177_v14 = vld [vmem:[%s325_s2 + $0x1] ss:$0 sm:$0xff] }
  0x28   :  { %187 = vmatpush3.bf16.msra.mxu0 %v206_v1  ;;  %193 = vmatpush3.bf16.msra.mxu1 %v207_v4 }
  0x29   :  { %194 = vmatprep.subr.bf16.mxu1 %v261_v0 }
  0x2b   :  { %189 = vmatmul.mubr.msk.bf16.vlgmr.msra.gmra.mrb[0].mxu0 %vm61_vm1, %v42_v3 }
  0x2c   :  { %195 = vmatpush3.bf16.msra.mxu1 %v208_v5 }
  0xfe   :  { %v99_v7 = vpop.f32.mrb[0].mxu0 }
  0xff   :  { %v100_v8 = vadd.f32 %v174_v6, %v99_v7  ;;  %v190_v9 = vpop.f32.mrb[1].mxu0 }
 0x100   :  { %v102_v10 = vpop.f32.mrb[2].mxu0 }
 0x101   :  { %v105_v11 = vmax.f32 %v100_v8, 0.0  ;;  %v191_v12 = vpop.f32.mrb[3].mxu0 }
 0x103   :  { %v106_v13 = vpack.c.bf16 %v105_v11, %v105_v11 }
 0x105   :  { %197 = vmatmul.mubr.msk.bf16.vlgmr.msra.gmra.mrb[0].mxu1 %vm123_vm2, %v106_v13 }
 0x1d8   :  { %v161_v15 = vpop.f32.mrb[0].mxu1 }
 0x1d9   :  { %v162_v16 = vadd.f32 %v177_v14, %v161_v15  ;;  %v198_v17 = vpop.f32.mrb[1].mxu1 }
 0x1da   :  { %v164_v18 = vpop.f32.mrb[2].mxu1 }
 0x1db   :  { %167 = vst [vmem:[%s326_s3] sm:$0xff] %v162_v16  ;;  %v199_v19 = vpop.f32.mrb[3].mxu1 }
 0x1dc   :  { %172 = vsyncpa [#allocation3], 1 }
 0x1dd   :  { %173 = vsyncpa [#allocation5], 1 }

</bundles_post_ra>
